<compile_context>
chip_gen: v7x
topology: tpu7x:2x2x1
jax: 0.10.0
libtpu: 0.0.40
codegen_flags: <defaults>
</compile_context>

<pallas_src>
import jax
import jax.numpy as jnp
from jax import lax
from jax.experimental import pallas as pl
from jax.experimental.pallas import tpu as pltpu

JITTER = 1e-6
LOG_BETA = -4.0                                      # nn.Parameter(torch.ones(1) * -4)
LOG_LENGTH_SCALES = jnp.zeros((1,), jnp.float32)     # ARDKernel(1) params (exp() = 1)
LOG_SIGNAL_VARIANCE = jnp.zeros((1,), jnp.float32)


def _round_up(x, m):
    return ((x + m - 1) // m) * m


# ---------------------------------------------------------------------------
# Kernel 1: tiled ARD-RBF Gram matrix
#   K[i,j] = sv * exp(-0.5 * sum_d ((a_id - b_jd) / ls_d)^2)
# Options:
#   add_diag   -- fuse (noise + jitter) * I into diagonal-touching tiles only
#   lower_only -- compute only tiles containing row >= col elements; upper
#                 tiles are written as zeros (valid when the result is only
#                 consumed by a lower-triangle Cholesky).
# ---------------------------------------------------------------------------
def _make_ard_rbf_kernel(add_diag: bool, lower_only: bool):
    def kernel(scal_ref, a_ref, bt_ref, ilsr_ref, ilsc_ref, o_ref):
        i = pl.program_id(0)
        j = pl.program_id(1)
        tm, tn = o_ref.shape
        D = a_ref.shape[1]

        def compute_tile():
            a = a_ref[...] * ilsr_ref[...]                       # (tm, D)
            bt = bt_ref[...] * ilsc_ref[...]                     # (D, tn) lane-dense
            aa = jnp.sum(a * a, axis=1, keepdims=True)           # (tm, 1)
            bb = jnp.sum(bt * bt, axis=0, keepdims=True)         # (1, tn) no transpose
            if D >= 2:
                # route contraction through the MXU (vmatmul slot is otherwise
                # idle; keeps the saturating VALU slot free)
                ab = lax.dot_general(
                    a, bt, dimension_numbers=(((1,), (0,)), ((), ())),
                    preferred_element_type=jnp.float32)          # (tm, tn)
            else:
                # D == 1: VPU broadcast outer product
                ab = a[:, 0:1] * bt[0:1, :]
            sqdist = jnp.maximum(aa + bb - 2.0 * ab, 0.0)
            o_ref[...] = scal_ref[0] * jnp.exp(-0.5 * sqdist)

        if lower_only:
            strict_upper = (i + 1) * tm <= j * tn    # every element has row < col

            @pl.when(strict_upper)
            def _():
                o_ref[...] = jnp.zeros_like(o_ref)

            @pl.when(jnp.logical_not(strict_upper))
            def _():
                compute_tile()
        else:
            compute_tile()

        if add_diag:
            # tile touches the diagonal iff row-range and col-range overlap
            touches_diag = jnp.logical_and(i * tm < (j + 1) * tn,
                                           j * tn < (i + 1) * tm)

            @pl.when(touches_diag)
            def _():
                row = jax.lax.broadcasted_iota(jnp.int32, (tm, tn), 0) + i * tm
                col = jax.lax.broadcasted_iota(jnp.int32, (tm, tn), 1) + j * tn
                o_ref[...] = o_ref[...] + jnp.where(
                    row == col, scal_ref[1], jnp.float32(0.0))

    return kernel


def ard_rbf_gram(A, B, inv_ls, sv, diag_add=None, lower_only=False,
                 *, tm=512, tn=512):
    """K(A, B) with optional fused `diag_add * I` / lower-triangle-only mode."""
    A = A.astype(jnp.float32)
    B = B.astype(jnp.float32)
    M, D = A.shape
    N = B.shape[0]

    # tile sizes: multiples of (8, 128); pad point sets with zero rows so the
    # grid divides exactly (padded region is sliced off afterwards).
    tm = _round_up(min(tm, _round_up(M, 8)), 8)
    tn = _round_up(min(tn, _round_up(N, 128)), 128)
    m_pad = _round_up(M, tm)
    n_pad = _round_up(N, tn)
    if m_pad != M:
        A = jnp.pad(A, ((0, m_pad - M), (0, 0)))
    if n_pad != N:
        B = jnp.pad(B, ((0, n_pad - N), (0, 0)))

    add_diag = diag_add is not None
    if not add_diag:
        diag_add = jnp.float32(0.0)
    scal = jnp.stack([jnp.asarray(sv, jnp.float32),
                      jnp.asarray(diag_add, jnp.float32)])    # SMEM scalars
    b_t = jnp.transpose(B)                                    # (D, N_pad) lane-major
    ilsr = inv_ls.reshape(1, D).astype(jnp.float32)
    ilsc = inv_ls.reshape(D, 1).astype(jnp.float32)

    grid = (m_pad // tm, n_pad // tn)
    out = pl.pallas_call(
        _make_ard_rbf_kernel(add_diag, lower_only),
        out_shape=jax.ShapeDtypeStruct((m_pad, n_pad), jnp.float32),
        grid_spec=pltpu.PrefetchScalarGridSpec(
            num_scalar_prefetch=1,
            grid=grid,
            in_specs=[
                pl.BlockSpec((tm, D), lambda i, j, s: (i, 0)),
                pl.BlockSpec((D, tn), lambda i, j, s: (0, j)),
                pl.BlockSpec((1, D), lambda i, j, s: (0, 0)),
                pl.BlockSpec((D, 1), lambda i, j, s: (0, 0)),
            ],
            out_specs=pl.BlockSpec((tm, tn), lambda i, j, s: (i, j)),
        ),
        compiler_params=pltpu.CompilerParams(
            dimension_semantics=("parallel", "parallel")),
    )(scal, A, b_t, ilsr, ilsc)
    if m_pad != M or n_pad != N:
        out = out[:M, :N]
    return out


# ---------------------------------------------------------------------------
# Kernel 2: posterior mean + diagonal variance (lane-dense (1, Nte) outputs),
# streaming over the training axis with an "arbitrary" reduction grid dim:
#   mean[j]     = sum_i kxt[i,j] * alpha[i]          (alpha = Sigma^-1 ytr)
#   var_diag[j] = sv - sum_i v[i,j]^2 + beta_inv     (v = L^-1 kxt)
# ---------------------------------------------------------------------------
def _posterior_kernel(scal_ref, kxt_ref, alpha_ref, v_ref, mean_ref, var_ref,
                      msum_ref, qsum_ref):
    t = pl.program_id(1)

    @pl.when(t == 0)
    def _():
        msum_ref[...] = jnp.zeros_like(msum_ref)
        qsum_ref[...] = jnp.zeros_like(qsum_ref)

    kxt = kxt_ref[...]                                        # (tk, tn)
    v = v_ref[...]                                            # (tk, tn)
    msum_ref[...] += jnp.sum(kxt * alpha_ref[...], axis=0, keepdims=True)
    qsum_ref[...] += jnp.sum(v * v, axis=0, keepdims=True)

    @pl.when(t == pl.num_programs(1) - 1)
    def _():
        mean_ref[...] = msum_ref[...]
        var_ref[...] = (scal_ref[0] - qsum_ref[...]) + scal_ref[1]


def posterior_diag(kxt, alpha, v, sv, beta_inv, *, tn=512, tk=1024):
    ntr, nte = kxt.shape
    tk = _round_up(min(tk, _round_up(ntr, 8)), 8)
    tn = _round_up(min(tn, _round_up(nte, 128)), 128)
    ntr_pad = _round_up(ntr, tk)
    nte_pad = _round_up(nte, tn)
    if ntr_pad != ntr or nte_pad != nte:
        # zero rows / cols contribute nothing to the reductions
        kxt = jnp.pad(kxt, ((0, ntr_pad - ntr), (0, nte_pad - nte)))
        v = jnp.pad(v, ((0, ntr_pad - ntr), (0, nte_pad - nte)))
        alpha = jnp.pad(alpha, ((0, ntr_pad - ntr), (0, 0)))

    scal = jnp.stack([jnp.asarray(sv, jnp.float32),
                      jnp.asarray(beta_inv, jnp.float32)])
    grid = (nte_pad // tn, ntr_pad // tk)                     # reduction axis last
    mean_row, var_row = pl.pallas_call(
        _posterior_kernel,
        out_shape=(jax.ShapeDtypeStruct((1, nte_pad), jnp.float32),
                   jax.ShapeDtypeStruct((1, nte_pad), jnp.float32)),
        grid_spec=pltpu.PrefetchScalarGridSpec(
            num_scalar_prefetch=1,
            grid=grid,
            in_specs=[
                pl.BlockSpec((tk, tn), lambda j, t, s: (t, j)),
                pl.BlockSpec((tk, 1), lambda j, t, s: (t, 0)),
                pl.BlockSpec((tk, tn), lambda j, t, s: (t, j)),
            ],
            out_specs=(pl.BlockSpec((1, tn), lambda j, t, s: (0, j)),
                       pl.BlockSpec((1, tn), lambda j, t, s: (0, j))),
            scratch_shapes=[pltpu.VMEM((1, tn), jnp.float32),
                            pltpu.VMEM((1, tn), jnp.float32)],
        ),
        compiler_params=pltpu.CompilerParams(
            dimension_semantics=("parallel", "arbitrary")),
    )(scal, kxt, alpha, v)
    mean = mean_row[:, :nte].reshape(nte, 1)
    var = var_row[:, :nte].reshape(nte, 1)
    return mean, var


# ---------------------------------------------------------------------------
# cigp.forward
# ---------------------------------------------------------------------------
def cigp_forward(xtr, ytr, xte, *, tile_m=512, tile_n=512):
    xtr = xtr.astype(jnp.float32)
    ytr = ytr.astype(jnp.float32)
    xte = xte.astype(jnp.float32)

    inv_ls = jnp.exp(-LOG_LENGTH_SCALES)                  # (D,)  1/lengthscale
    sv = jnp.exp(LOG_SIGNAL_VARIANCE)[0]                  # signal variance
    beta_inv = jnp.exp(jnp.float32(-LOG_BETA))            # exp(log_beta)^-1

    # Sigma = K(xtr,xtr) + (beta^-1 + JITTER) I, materialized lower-triangular
    # only (upper tiles zeroed) -- Cholesky below reads only the lower triangle.
    sigma_lower = ard_rbf_gram(xtr, xtr, inv_ls, sv,
                               diag_add=beta_inv + jnp.float32(JITTER),
                               lower_only=True, tm=tile_m, tn=tile_n)
    kxt = ard_rbf_gram(xtr, xte, inv_ls, sv, tm=tile_m, tn=tile_n)

    # TODO(synk): Cholesky factorization / triangular solves have no clean
    # Pallas equivalent; kept in plain JAX (glue). symmetrize_input=False is
    # required because sigma_lower only carries the lower triangle.
    L = jax.lax.linalg.cholesky(sigma_lower, symmetrize_input=False)
    alpha = jax.scipy.linalg.cho_solve((L, True), ytr)          # Sigma^-1 ytr
    v = jax.scipy.linalg.solve_triangular(L, kxt, lower=True)   # L^-1 kxt

    # diag(kxt^T Sigma^-1 kxt) == column sums of squares of v, and
    # diag(K(xte,xte)) == sv for ARD-RBF, so k_tt is never materialized.
    mean, var_diag = posterior_diag(kxt, alpha, v, sv, beta_inv)
    return mean, var_diag


# ---------------------------------------------------------------------------
# Pure-JAX reference (mirrors the PyTorch baseline) for correctness checking.
# ---------------------------------------------------------------------------
def _cigp_forward_ref(xtr, ytr, xte):
    inv_ls = jnp.exp(-LOG_LENGTH_SCALES)
    sv = jnp.exp(LOG_SIGNAL_VARIANCE)[0]
    beta_inv = jnp.exp(jnp.float32(-LOG_BETA))

    def k(a, b):
        a = a * inv_ls
        b = b * inv_ls
        sq = (jnp.sum(a * a, 1)[:, None] + jnp.sum(b * b, 1)[None, :]
              - 2.0 * a @ b.T)
        return sv * jnp.exp(-0.5 * sq)

    ntr = xtr.shape[0]
    sigma = k(xtr, xtr) + (beta_inv + JITTER) * jnp.eye(ntr, dtype=jnp.float32)
    kxt = k(xtr, xte)
    ktt = k(xte, xte)
    L = jnp.linalg.cholesky(sigma)
    alpha = jax.scipy.linalg.cho_solve((L, True), ytr)
    skxt = jax.scipy.linalg.cho_solve((L, True), kxt)
    mean = kxt.T @ alpha
    var = ktt - kxt.T @ skxt
    var_diag = jnp.diag(var)[:, None] + beta_inv
    return mean, var_diag


if __name__ == "__main__":
    key = jax.random.PRNGKey(0)
    k1, k2, k3 = jax.random.split(key, 3)

    ntr, nte, d = 256, 128, 1                 # ARDKernel(1) -> input dim 1
    xtr = jax.random.normal(k1, (ntr, d), jnp.float32)
    ytr = jnp.sin(3.0 * xtr) + 0.1 * jax.random.normal(k2, (ntr, 1), jnp.float32)
    xte = jax.random.normal(k3, (nte, d), jnp.float32)

    # 128-tiles so the demo exercises a multi-block grid (diag gating, the
    # lower-only zero tile, and both grid axes).  For real problem sizes the
    # 512 defaults are preferred: per-step VMEM is only a few MiB at 512 (and
    # ~8 MiB at 1024), far below the VMEM budget on v5e/v6e/v7x.
    mean, var_diag = cigp_forward(xtr, ytr, xte, tile_m=128, tile_n=128)
    jax.block_until_ready((mean, var_diag))

    assert mean.shape == (nte, 1) and var_diag.shape == (nte, 1)
    assert bool(jnp.all(jnp.isfinite(mean))) and bool(jnp.all(var_diag > 0))

    mean_ref, var_ref = _cigp_forward_ref(xtr, ytr, xte)
    assert bool(jnp.allclose(mean, mean_ref, atol=3e-3, rtol=3e-3))
    assert bool(jnp.allclose(var_diag, var_ref, atol=3e-3, rtol=3e-3))

    print("KERNEL_OK")
</pallas_src>

<mosaic_0001>
module attributes {stable_mosaic.version = 11 : i64} {
  func.func @kernel(%arg0: i32, %arg1: i32, %arg2: memref<2xf32, #tpu.memory_space<smem>>, %arg3: memref<128x1xf32, #tpu.memory_space<vmem>>, %arg4: memref<1x128xf32, #tpu.memory_space<vmem>>, %arg5: memref<1x1xf32, #tpu.memory_space<vmem>>, %arg6: memref<1x1xf32, #tpu.memory_space<vmem>>, %arg7: memref<128x128xf32, #tpu.memory_space<vmem>>) attributes {dimension_semantics = [#tpu.dimension_semantics<parallel>, #tpu.dimension_semantics<parallel>], iteration_bounds = array<i64: 2, 2>, scalar_prefetch = 1 : i64, scratch_operands = 0 : i64, tpu.core_type = #tpu.core_type<tc>, window_params = [{transform_indices = @transform_0, window_bounds = array<i64: 128, 1>}, {transform_indices = @transform_1, window_bounds = array<i64: 1, 128>}, {pipeline_mode = #tpu.pipeline_mode<synchronous>, transform_indices = @transform_2, window_bounds = array<i64: 1, 1>}, {pipeline_mode = #tpu.pipeline_mode<synchronous>, transform_indices = @transform_3, window_bounds = array<i64: 1, 1>}, {transform_indices = @transform_4, window_bounds = array<i64: 128, 128>}]} {
    %c1_i32 = arith.constant 1 : i32
    %0 = arith.addi %arg0, %c1_i32 : i32
    %c128_i32 = arith.constant 128 : i32
    %1 = arith.muli %0, %c128_i32 : i32
    %c128_i32_0 = arith.constant 128 : i32
    %2 = arith.muli %arg1, %c128_i32_0 : i32
    %3 = arith.cmpi sle, %1, %2 : i32
    %4 = arith.extui %3 : i1 to i32
    %c0_i32 = arith.constant 0 : i32
    %5 = arith.cmpi ne, %4, %c0_i32 : i32
    scf.if %5 {
      %cst = arith.constant 0.000000e+00 : f32
      %20 = vector.broadcast %cst : f32 to vector<128x128xf32>
      %c0 = arith.constant 0 : index
      %c0_9 = arith.constant 0 : index
      %21 = vector.load %arg7[%c0, %c0_9] : memref<128x128xf32, #tpu.memory_space<vmem>>, vector<128x128xf32>
      tpu.vector_store %arg7[%c0, %c0_9], %20 {strides = array<i32>} : memref<128x128xf32, #tpu.memory_space<vmem>>, vector<128x128xf32>,
    } else {
    }
    %true = arith.constant true
    %6 = arith.xori %3, %true : i1
    %7 = arith.extui %6 : i1 to i32
    %c0_i32_1 = arith.constant 0 : i32
    %8 = arith.cmpi ne, %7, %c0_i32_1 : i32
    scf.if %8 {
      %c0 = arith.constant 0 : index
      %c0_9 = arith.constant 0 : index
      %20 = vector.load %arg3[%c0, %c0_9] : memref<128x1xf32, #tpu.memory_space<vmem>>, vector<128x1xf32>
      %c0_10 = arith.constant 0 : index
      %c0_11 = arith.constant 0 : index
      %21 = vector.load %arg5[%c0_10, %c0_11] : memref<1x1xf32, #tpu.memory_space<vmem>>, vector<1x1xf32>
      %22 = vector.broadcast %21 : vector<1x1xf32> to vector<128x1xf32>
      %23 = arith.mulf %20, %22 : vector<128x1xf32>
      %c0_12 = arith.constant 0 : index
      %c0_13 = arith.constant 0 : index
      %24 = vector.load %arg4[%c0_12, %c0_13] : memref<1x128xf32, #tpu.memory_space<vmem>>, vector<1x128xf32>
      %c0_14 = arith.constant 0 : index
      %c0_15 = arith.constant 0 : index
      %25 = vector.load %arg6[%c0_14, %c0_15] : memref<1x1xf32, #tpu.memory_space<vmem>>, vector<1x1xf32>
      %26 = vector.broadcast %25 : vector<1x1xf32> to vector<1x128xf32>
      %27 = arith.mulf %24, %26 : vector<1x128xf32>
      %28 = arith.mulf %23, %23 : vector<128x1xf32>
      %cst = arith.constant dense<0.000000e+00> : vector<128xf32>
      %29 = vector.multi_reduction <add>, %28, %cst [1] : vector<128x1xf32> to vector<128xf32>
      %30 = vector.shape_cast %29 : vector<128xf32> to vector<128x1xf32>
      %31 = arith.mulf %27, %27 : vector<1x128xf32>
      %cst_16 = arith.constant dense<0.000000e+00> : vector<128xf32>
      %32 = vector.multi_reduction <add>, %31, %cst_16 [0] : vector<1x128xf32> to vector<128xf32>
      %33 = vector.shape_cast %32 : vector<128xf32> to vector<1x128xf32>
      %34 = vector.broadcast %23 : vector<128x1xf32> to vector<128x128xf32>
      %35 = vector.broadcast %27 : vector<1x128xf32> to vector<128x128xf32>
      %36 = arith.mulf %34, %35 : vector<128x128xf32>
      %37 = vector.broadcast %30 : vector<128x1xf32> to vector<128x128xf32>
      %38 = vector.broadcast %33 : vector<1x128xf32> to vector<128x128xf32>
      %39 = arith.addf %37, %38 : vector<128x128xf32>
      %cst_17 = arith.constant 2.000000e+00 : f32
      %40 = vector.broadcast %cst_17 : f32 to vector<128x128xf32>
      %41 = arith.mulf %40, %36 : vector<128x128xf32>
      %42 = arith.subf %39, %41 : vector<128x128xf32>
      %cst_18 = arith.constant 0.000000e+00 : f32
      %43 = vector.broadcast %cst_18 : f32 to vector<128x128xf32>
      %44 = arith.maximumf %42, %43 : vector<128x128xf32>
      %c0_19 = arith.constant 0 : index
      %45 = memref.load %arg2[%c0_19] : memref<2xf32, #tpu.memory_space<smem>>
      %cst_20 = arith.constant -5.000000e-01 : f32
      %46 = vector.broadcast %cst_20 : f32 to vector<128x128xf32>
      %47 = arith.mulf %46, %44 : vector<128x128xf32>
      %48 = math.exp %47 : vector<128x128xf32>
      %49 = vector.broadcast %45 : f32 to vector<128x128xf32>
      %50 = arith.mulf %49, %48 : vector<128x128xf32>
      %c0_21 = arith.constant 0 : index
      %c0_22 = arith.constant 0 : index
      %51 = vector.load %arg7[%c0_21, %c0_22] : memref<128x128xf32, #tpu.memory_space<vmem>>, vector<128x128xf32>
      tpu.vector_store %arg7[%c0_21, %c0_22], %50 {strides = array<i32>} : memref<128x128xf32, #tpu.memory_space<vmem>>, vector<128x128xf32>,
    } else {
    }
    %c128_i32_2 = arith.constant 128 : i32
    %9 = arith.muli %arg0, %c128_i32_2 : i32
    %c1_i32_3 = arith.constant 1 : i32
    %10 = arith.addi %arg1, %c1_i32_3 : i32
    %c128_i32_4 = arith.constant 128 : i32
    %11 = arith.muli %10, %c128_i32_4 : i32
    %12 = arith.cmpi slt, %9, %11 : i32
    %c128_i32_5 = arith.constant 128 : i32
    %13 = arith.muli %arg1, %c128_i32_5 : i32
    %c1_i32_6 = arith.constant 1 : i32
    %14 = arith.addi %arg0, %c1_i32_6 : i32
    %c128_i32_7 = arith.constant 128 : i32
    %15 = arith.muli %14, %c128_i32_7 : i32
    %16 = arith.cmpi slt, %13, %15 : i32
    %17 = arith.andi %12, %16 : i1
    %18 = arith.extui %17 : i1 to i32
    %c0_i32_8 = arith.constant 0 : i32
    %19 = arith.cmpi ne, %18, %c0_i32_8 : i32
    scf.if %19 {
      %20 = tpu.iota {dimensions = array<i32: 0>} : vector<128x128xi32>
      %c128_i32_9 = arith.constant 128 : i32
      %21 = arith.muli %arg0, %c128_i32_9 : i32
      %22 = vector.broadcast %21 : i32 to vector<128x128xi32>
      %23 = arith.addi %20, %22 : vector<128x128xi32>
      %24 = tpu.iota {dimensions = array<i32: 1>} : vector<128x128xi32>
      %c128_i32_10 = arith.constant 128 : i32
      %25 = arith.muli %arg1, %c128_i32_10 : i32
      %26 = vector.broadcast %25 : i32 to vector<128x128xi32>
      %27 = arith.addi %24, %26 : vector<128x128xi32>
      %c0 = arith.constant 0 : index
      %c0_11 = arith.constant 0 : index
      %28 = vector.load %arg7[%c0, %c0_11] : memref<128x128xf32, #tpu.memory_space<vmem>>, vector<128x128xf32>
      %29 = arith.cmpi eq, %23, %27 : vector<128x128xi32>
      %c1 = arith.constant 1 : index
      %30 = memref.load %arg2[%c1] : memref<2xf32, #tpu.memory_space<smem>>
      %cst = arith.constant 0.000000e+00 : f32
      %31 = vector.broadcast %30 : f32 to vector<128x128xf32>
      %32 = vector.broadcast %cst : f32 to vector<128x128xf32>
      %33 = arith.select %29, %31, %32 : vector<128x128xi1>, vector<128x128xf32>
      %34 = arith.addf %28, %33 : vector<128x128xf32>
      %c0_12 = arith.constant 0 : index
      %c0_13 = arith.constant 0 : index
      %35 = vector.load %arg7[%c0_12, %c0_13] : memref<128x128xf32, #tpu.memory_space<vmem>>, vector<128x128xf32>
      tpu.vector_store %arg7[%c0_12, %c0_13], %34 {strides = array<i32>} : memref<128x128xf32, #tpu.memory_space<vmem>>, vector<128x128xf32>,
    } else {
    }
    return
  }
  func.func @transform_0(%arg0: i32, %arg1: i32, %arg2: memref<2xf32, #tpu.memory_space<smem>>) -> (i32, i32) {
    %c0_i32 = arith.constant 0 : i32
    %c0_i32_0 = arith.constant 0 : i32
    return %arg0, %c0_i32 : i32, i32
  }
  func.func @transform_1(%arg0: i32, %arg1: i32, %arg2: memref<2xf32, #tpu.memory_space<smem>>) -> (i32, i32) {
    %c0_i32 = arith.constant 0 : i32
    %c0_i32_0 = arith.constant 0 : i32
    return %c0_i32, %arg1 : i32, i32
  }
  func.func @transform_2(%arg0: i32, %arg1: i32, %arg2: memref<2xf32, #tpu.memory_space<smem>>) -> (i32, i32) {
    %c0_i32 = arith.constant 0 : i32
    %c0_i32_0 = arith.constant 0 : i32
    %c0_i32_1 = arith.constant 0 : i32
    return %c0_i32, %c0_i32_0 : i32, i32
  }
  func.func @transform_3(%arg0: i32, %arg1: i32, %arg2: memref<2xf32, #tpu.memory_space<smem>>) -> (i32, i32) {
    %c0_i32 = arith.constant 0 : i32
    %c0_i32_0 = arith.constant 0 : i32
    %c0_i32_1 = arith.constant 0 : i32
    return %c0_i32, %c0_i32_0 : i32, i32
  }
  func.func @transform_4(%arg0: i32, %arg1: i32, %arg2: memref<2xf32, #tpu.memory_space<smem>>) -> (i32, i32) {
    %c0_i32 = arith.constant 0 : i32
    return %arg0, %arg1 : i32, i32
  }
}

</mosaic_0001>

<bundles_post_ra>
// kernel: tpu_custom_call.1
= control target key start
LH: loop header
LB: loop body
LE: loop exit
PB: predicated region body
PF: predicated region fallthrough
CT: control target
= control target key end

     0   :  { %s1606_s0 = inlined_call_operand.vmem [shape: f32[2], index: 0, kind: input, shape index: {}]   ;;  %s1607_s1 = inlined_call_operand.vmem [shape: f32[256,1], index: 1, kind: input, shape index: {}]   ;;  %s1608_s2 = inlined_call_operand.vmem [shape: f32[1,256], index: 2, kind: input, shape index: {}]   ;;  %s1609_s5 = inlined_call_operand.hbm [shape: f32[256,256], index: 5, kind: output, shape index: {}]   ;;  %s1610_s3 = inlined_call_operand.<no memory space> [shape: f32[1,1], index: 3, kind: input, shape index: {}]   ;;  %s1611_s4 = inlined_call_operand.<no memory space> [shape: f32[1,1], index: 4, kind: input, shape index: {}]  }
   0x1   :  { %s10_s20 = sshll.u32 %s1606_s0, 4  ;;  %v14_v0 = vstv %s1610_s3  ;;  %v16_v1 = vstv %s1611_s4  ;;  %s11_s20 = int_to_ptr.vmem [resolvable:$true] %s10_s20 }
   0x2   :  { %15 = vst [vmem:[#allocation4] sm:$0x1] %v14_v0  ;;  %17 = vst [vmem:[#allocation5] sm:$0x1] %v16_v1  ;;  %s1051_s25 = scalar_lea.vmem %s11_s20, 16  ;;  %p1056_p1 = scmp.lt.s32.totalorder %s11_s20, %s11_s20 }
   0x3   :  { %p1052_p0 = scmp.ne.s32.totalorder %s11_s20, %s1051_s25  ;;  %p1057_p2 = scmp.lt.s32.totalorder %s1051_s25, %s1051_s25 }
   0x5   :  { %p1058_p3 = por %p1057_p2, %p1056_p1 }
   0x7   :  { %p1059_p4 = pnand %p1058_p3, %p1052_p0 }
   0x9   :  { %1062 = shalt.err (!%p1059_p4)  }
   0xa   :  { %s1161_s26 = smov [#allocation3]  }
   0xb   :  { %13 = dma.vmem_to_smem %s11_s20, 16, %s1161_s26, [#allocation2] }
   0xc   :  { %1123 = dma.done.wait [#allocation2], 16 }
   0xd   :  { %1124 = vsyncadd [#allocation2], 4294967280 }
   0xe   :  { %19 = sfence }
   0xf   :  { %20 = vsyncpa [#allocation7], 0 }
  0x10   :  { %22 = vsyncpa [#allocation7 + $0x1], 0  ;;  %s1207_s0 = smov 0   ;;  %s1209_s3 = smov 0  }
  0x11   :  { %s1211_s4 = smov 0   ;;  %s1213_s27 = smov 0  }
  0x12   :  { %s1215_s28 = smov 0   ;;  %s1217_s29 = smov 0  }
  0x13   :  { %s1219_s30 = smov 0   ;;  %s1221_s6 = smov 0  }
  0x14 LB: > { %s913_s7 = sadd.s32 4294967295, %s1159_s6   ;;  %s914_s8 = sadd.s32 4294967294, %s1159_s6   ;;  %s1159_s6 = sphi %s1221_s6, %s28_s6   ;;  %s1155_s30 = sphi %s1219_s30, %s1620_s30   ;;  %s1151_s29 = sphi %s1217_s29, %s1619_s29   ;;  %s1147_s28 = sphi %s1215_s28, %s1618_s28   ;;  %s1143_s27 = sphi %s1213_s27, %s1617_s27   ;;  %s1139_s4 = sphi %s1211_s4, %s1616_s4   ;;  %s1135_s3 = sphi %s1209_s3, %s1615_s3   ;;  %s1131_s0 = sphi %s1207_s0, %s1614_s0  }
  0x15   : > { %s37_s9 = sadd.s32 1, %s1151_s29  ;;  %s40_s10 = sadd.s32 1, %s1155_s30 }
  0x16   : > { %p38_p5 = scmp.ge.s32.totalorder %s37_s9, 2  ;;  %p153_p6 = scmp.ne.s32.totalorder %s1139_s4, %s1135_s3 }
  0x17   : > { %p154_p7 = scmp.eq.s32.totalorder %s913_s7, 3  ;;  %p159_p10 = scmp.ne.s32.totalorder %s1135_s3, %s1131_s0 }
  0x18   : > { %s1622_s9 = smov (%p38_p5, %s37_s9), 0  ;;  %s1624_s10 = smov (!%p38_p5, %s40_s10), %s1155_s30 }
  0x19   : > { %s139_s11 = ssub.s32 %s1151_s29, %s1622_s9  ;;  %p1258_p8 = por %p154_p7, %p153_p6 }
  0x1a   : > { %p42_p9 = scmp.ge.s32.totalorder %s1624_s10, 2  ;;  %p160_p11 = scmp.eq.s32.totalorder %s914_s8, 3 }
  0x1b   : > { %p917_p12 = scmp.ge.s32.totalorder %s1159_s6, 1  ;;  %p199_p0 = scmp.lt.s32.totalorder %s1159_s6, 5 }
  0x1c   : > { %s1626_s10 = smov (%p42_p9, %s1624_s10), 0  ;;  %p1267_p13 = por %p160_p11, %p159_p10 }
  0x1d   : > { %s138_s14 = ssub.s32 %s1155_s30, %s1626_s10  ;;  %s143_s15 = sadd.s32 1, %s1139_s4 }
  0x1e   : > { %s140_s16 = sor.u32 %s139_s11, %s138_s14  ;;  %p200_p1 = pnand %p917_p12, %p199_p0 }
  0x1f   : > { %p141_p2 = scmp.eq.s32.totalorder %s140_s16, 0  ;;  %s225_s18 = sand.u32 (!%p200_p1), 1, %s1135_s3  }
  0x20   : > { %203 = sbr.rel (%p200_p1) target bundleno = 331 (0x14b), region = 36  ;;  %s919_s19 = sshll.u32 (!%p200_p1), %s1147_s28, 4 }
  0x21   : > { %s1276_s17 = scalar_select %p141_p2, %s1139_s4, %s143_s15  }
  0x22   : > { %s918_s20 = sshll.u32 (!%p200_p1), %s225_s18, 7  ;;  %p229_p3 = scmp.lt.s32.totalorder (!%p200_p1), %s919_s19, 31 }
  0x23   : > { %p234_p4 = scmp.lt.s32.totalorder (!%p200_p1), %s1143_s27, 1  ;;  %s1287_s23 = sshll.u32 (!%p200_p1), %s1147_s28, 7 }
  0x24   : > { %s1299_s14 = sadd.s32 (!%p200_p1), 128, %s1287_s23  ;;  %s1302_s15 = sshll.u32 (!%p200_p1), %s1143_s27, 7 }
  0x25   : > { %s1304_s16 = scalar_lea.vmem (!%p200_p1), [#allocation6], %s918_s20  ;;  %p923_p5 = scmp.gt.s32.totalorder (!%p200_p1), %s1299_s14, %s1302_s15 }
  0x27   : > { %s1628_s19 = smov (!%p229_p3, %s919_s19), 31  ;;  %244 = sbr.rel (%p923_p5) target bundleno = 50 (0x32), region = 40 }
  0x28   : > { %s1284_s21 = scalar_select %p234_p4, %s1143_s27, 1 }
  0x29   : > { %s920_s22 = sshll.u32 %s1628_s19, 3  ;;  %v1162_v2 = vmov (!%p923_p5), 0.0  }
  0x2a   : > { %s1292_s26 = scalar_lea.vmem %s1607_s1, %s920_s22  ;;  %s236_s11 = scalar_lea.vmem %s1608_s2, %s1284_s21  ;;  %245 = vst [vmem:[%s1304_s16] sm:$0xff] (!%p923_p5), %v1162_v2  ;;  %246 = vst [vmem:[%s1304_s16 + $0x8] sm:$0xff] (!%p923_p5), %v1162_v2 }
  0x2b   : > { %247 = vst [vmem:[%s1304_s16 + $0x10] sm:$0xff] (!%p923_p5), %v1162_v2  ;;  %248 = vst [vmem:[%s1304_s16 + $0x18] sm:$0xff] (!%p923_p5), %v1162_v2 }
  0x2c   : > { %249 = vst [vmem:[%s1304_s16 + $0x20] sm:$0xff] (!%p923_p5), %v1162_v2  ;;  %250 = vst [vmem:[%s1304_s16 + $0x28] sm:$0xff] (!%p923_p5), %v1162_v2 }
  0x2d   : > { %251 = vst [vmem:[%s1304_s16 + $0x30] sm:$0xff] (!%p923_p5), %v1162_v2  ;;  %252 = vst [vmem:[%s1304_s16 + $0x38] sm:$0xff] (!%p923_p5), %v1162_v2 }
  0x2e   : > { %253 = vst [vmem:[%s1304_s16 + $0x40] sm:$0xff] %v1162_v2  ;;  %254 = vst [vmem:[%s1304_s16 + $0x48] sm:$0xff] %v1162_v2 }
  0x2f   : > { %255 = vst [vmem:[%s1304_s16 + $0x50] sm:$0xff] %v1162_v2  ;;  %256 = vst [vmem:[%s1304_s16 + $0x58] sm:$0xff] %v1162_v2 }
  0x30   : > { %257 = vst [vmem:[%s1304_s16 + $0x60] sm:$0xff] %v1162_v2  ;;  %258 = vst [vmem:[%s1304_s16 + $0x68] sm:$0xff] %v1162_v2 }
  0x31   : > { %259 = vst [vmem:[%s1304_s16 + $0x70] sm:$0xff] %v1162_v2  ;;  %260 = vst [vmem:[%s1304_s16 + $0x78] sm:$0xff] %v1162_v2 }
  0x32 PF: > { %p924_p6 = scmp.le.s32.totalorder %s1299_s14, %s1302_s15 }
  0x33   : > { %v305_v3 = vld [vmem:[#allocation5] sm:$0x1] (!%p924_p6)  ;;  %v266_v4 = vld [vmem:[%s1292_s26 + $0x8] sm:$0xff] (!%p924_p6)  ;;  %v925_v5 = vld [vmem:[#allocation4] ss:$0 sm:$0xff] (!%p924_p6)  ;;  %v1163_v6 = vmov (!%p924_p6), 0   ;;  %v311_v58 = vlaneseq (!%p924_p6) }
  0x34   : > { %264 = sbr.rel (%p924_p6) target bundleno = 269 (0x10d), region = 44  ;;  %1017 = vset.pattern.permute.xlu0 (!%p924_p6), %v1163_v6  ;;  %1018 = vset.pattern.permute.xlu1 (!%p924_p6), %v1163_v6  ;;  %v289_v7 = vmul.f32 (!%p924_p6), %v925_v5, %v266_v4  ;;  %v265_v8 = vld [vmem:[%s1292_s26] sm:$0xff] (!%p924_p6)  ;;  %v267_v9 = vld [vmem:[%s1292_s26 + $0x10] sm:$0xff] (!%p924_p6)  ;;  %v268_v12 = vld [vmem:[%s1292_s26 + $0x18] sm:$0xff] (!%p924_p6)  ;;  %s602_s21 = sld [smem:[#allocation3]] (!%p924_p6) }
  0x35   : > { %308 = vperm.xlu0 (!%p924_p6), %1017, %v305_v3   ;;  %v288_v10 = vmul.f32 (!%p924_p6), %v925_v5, %v265_v8  ;;  %v290_v11 = vmul.f32 (!%p924_p6), %v925_v5, %v267_v9  ;;  %v269_v13 = vld [vmem:[%s1292_s26 + $0x20] sm:$0xff] (!%p924_p6)  ;;  %v291_v14 = vmul.f32 (!%p924_p6), %v925_v5, %v268_v12  ;;  %v270_v16 = vld [vmem:[%s1292_s26 + $0x28] sm:$0xff] (!%p924_p6)  ;;  %v271_v17 = vld [vmem:[%s1292_s26 + $0x30] sm:$0xff] (!%p924_p6)  ;;  %v312_v61 = vshrl.u32 (!%p924_p6), %v311_v58, 7 }
  0x36   : > { %357 = vperm.xlu1 (!%p924_p6), %1018, %v289_v7   ;;  %v292_v15 = vmul.f32 (!%p924_p6), %v925_v5, %v269_v13  ;;  %v293_v18 = vmul.f32 (!%p924_p6), %v925_v5, %v270_v16  ;;  %v294_v19 = vmul.f32 (!%p924_p6), %v925_v5, %v271_v17  ;;  %v272_v20 = vld [vmem:[%s1292_s26 + $0x38] sm:$0xff] (!%p924_p6)  ;;  %v273_v21 = vld [vmem:[%s1292_s26 + $0x40] sm:$0xff] (!%p924_p6)  ;;  %v274_v24 = vld [vmem:[%s1292_s26 + $0x48] sm:$0xff] (!%p924_p6)  ;;  %v317_v39 = vmul.f32 (!%p924_p6), %v289_v7, %v289_v7 }
  0x37   : > { %v295_v22 = vmul.f32 (!%p924_p6), %v925_v5, %v272_v20  ;;  %v296_v23 = vmul.f32 (!%p924_p6), %v925_v5, %v273_v21  ;;  %v275_v25 = vld [vmem:[%s1292_s26 + $0x50] sm:$0xff] (!%p924_p6)  ;;  %v297_v26 = vmul.f32 (!%p924_p6), %v925_v5, %v274_v24  ;;  %v276_v28 = vld [vmem:[%s1292_s26 + $0x58] sm:$0xff] (!%p924_p6)  ;;  %v277_v29 = vld [vmem:[%s1292_s26 + $0x60] sm:$0xff] (!%p924_p6)  ;;  %v316_v38 = vmul.f32 (!%p924_p6), %v288_v10, %v288_v10 }
  0x38   : > { %v298_v27 = vmul.f32 (!%p924_p6), %v925_v5, %v275_v25  ;;  %v299_v30 = vmul.f32 (!%p924_p6), %v925_v5, %v276_v28  ;;  %v300_v31 = vmul.f32 (!%p924_p6), %v925_v5, %v277_v29  ;;  %v278_v32 = vld [vmem:[%s1292_s26 + $0x68] sm:$0xff] (!%p924_p6)  ;;  %v279_v33 = vld [vmem:[%s1292_s26 + $0x70] sm:$0xff] (!%p924_p6)  ;;  %v280_v36 = vld [vmem:[%s1292_s26 + $0x78] sm:$0xff] (!%p924_p6)  ;;  %v318_v40 = vmul.f32 (!%p924_p6), %v290_v11, %v290_v11 }
  0x39   : > { %352 = vperm.xlu0 (!%p924_p6), %1017, %v288_v10   ;;  %v301_v34 = vmul.f32 (!%p924_p6), %v925_v5, %v278_v32  ;;  %v302_v35 = vmul.f32 (!%p924_p6), %v925_v5, %v279_v33  ;;  %v303_v37 = vmul.f32 (!%p924_p6), %v925_v5, %v280_v36  ;;  %v319_v41 = vmul.f32 (!%p924_p6), %v291_v14, %v291_v14  ;;  %v304_v4 = vld [vmem:[%s236_s11] sm:$0x1] (!%p924_p6) }
  0x3a   : > { %362 = vperm.xlu1 (!%p924_p6), %1018, %v290_v11   ;;  %v320_v42 = vmul.f32 (!%p924_p6), %v292_v15, %v292_v15  ;;  %v321_v43 = vmul.f32 (!%p924_p6), %v293_v18, %v293_v18  ;;  %v322_v44 = vmul.f32 (!%p924_p6), %v294_v19, %v294_v19  ;;  %v323_v45 = vmul.f32 (!%p924_p6), %v295_v22, %v295_v22 }
  0x3b   : > { %v324_v46 = vmul.f32 %v296_v23, %v296_v23  ;;  %v325_v47 = vmul.f32 %v297_v26, %v297_v26  ;;  %v326_v48 = vmul.f32 %v298_v27, %v298_v27  ;;  %v327_v49 = vmul.f32 %v299_v30, %v299_v30 }
  0x3c   : > { %v328_v50 = vmul.f32 %v300_v31, %v300_v31  ;;  %v329_v51 = vmul.f32 %v301_v34, %v301_v34  ;;  %v330_v52 = vmul.f32 %v302_v35, %v302_v35  ;;  %v331_v53 = vmul.f32 %v303_v37, %v303_v37 }
  0x3d   : > { %367 = vperm.xlu0 %1017, %v291_v14   ;;  %v313_v0 = vsub.s32 0, %v312_v61  ;;  %v1372_v36 = vstv %s602_s21 }
  0x3e   : > { %372 = vperm.xlu1 %1018, %v292_v15  }
  0x41   : > { %377 = vperm.xlu0 %1017, %v293_v18  }
  0x42   : > { %382 = vperm.xlu1 %1018, %v294_v19  }
  0x45   : > { %387 = vperm.xlu0 %1017, %v295_v22  }
  0x46   : > { %392 = vperm.xlu1 %1018, %v296_v23  }
  0x49   : > { %397 = vperm.xlu0 %1017, %v297_v26  }
  0x4a   : > { %402 = vperm.xlu1 %1018, %v298_v27  }
  0x4d   : > { %407 = vperm.xlu0 %1017, %v299_v30  }
  0x4e   : > { %412 = vperm.xlu1 %1018, %v300_v31  }
  0x51   : > { %417 = vperm.xlu0 %1017, %v301_v34  }
  0x52   : > { %422 = vperm.xlu1 %1018, %v302_v35  }
  0x55   : > { %427 = vperm.xlu0 %1017, %v303_v37  }
  0x56   : > { %454 = vperm.xlu1 %1018, %v316_v38  }
  0x59   : > { %459 = vperm.xlu0 %1017, %v317_v39  }
  0x5a   : > { %464 = vperm.xlu1 %1018, %v318_v40  }
  0x5d   : > { %469 = vperm.xlu0 %1017, %v319_v41  }
  0x5e   : > { %474 = vperm.xlu1 %1018, %v320_v42  }
  0x61   : > { %479 = vperm.xlu0 %1017, %v321_v43  }
  0x62   : > { %484 = vperm.xlu1 %1018, %v322_v44  }
  0x65   : > { %489 = vperm.xlu0 %1017, %v323_v45  }
  0x66   : > { %494 = vperm.xlu1 %1018, %v324_v46  }
  0x69   : > { %499 = vperm.xlu0 %1017, %v325_v47  }
  0x6a   : > { %504 = vperm.xlu1 %1018, %v326_v48  }
  0x6d   : > { %509 = vperm.xlu0 %1017, %v327_v49  }
  0x6e   : > { %514 = vperm.xlu1 %1018, %v328_v50  }
  0x71   : > { %519 = vperm.xlu0 %1017, %v329_v51  }
  0x72   : > { %524 = vperm.xlu1 %1018, %v330_v52  }
  0x75   : > { %529 = vperm.xlu0 %1017, %v331_v53  }
  0xb4   : > { %v309_v54 = vpop.permute.xlu0 %308 }
  0xb5   : > { %v358_v55 = vpop.permute.xlu1 %357  ;;  %v314_v3 = vrot.slane %v309_v54, %v313_v0 }
  0xb7   : > { %v315_v7 = vmul.f32 %v314_v3, %v304_v4 }
  0xb8   : > { %v353_v56 = vpop.permute.xlu0 %352 }
  0xb9   : > { %v363_v57 = vpop.permute.xlu1 %362  ;;  %v1351_v10 = vrot.slane %v315_v7, %v313_v0  ;;  %v348_v11 = vmul.f32 %v315_v7, %v315_v7 }
  0xbb   : > { %v436_v14 = vmul.f32 %v1351_v10, %v353_v56  ;;  %v1358_v15 = vrot.slane %v348_v11, %v313_v0  ;;  %v437_v17 = vmul.f32 %v1351_v10, %v358_v55  ;;  %v438_v20 = vmul.f32 %v1351_v10, %v363_v57 }
  0xbc   : > { %v368_v59 = vpop.permute.xlu0 %367 }
  0xbd   : > { %v373_v60 = vpop.permute.xlu1 %372  ;;  %v554_v19 = vmul.f32 2.0, %v436_v14  ;;  %v555_v24 = vmul.f32 2.0, %v437_v17  ;;  %v439_v25 = vmul.f32 %v1351_v10, %v368_v59  ;;  %v556_v29 = vmul.f32 2.0, %v438_v20 }
  0xbe   : > { %v440_v26 = vmul.f32 %v1351_v10, %v373_v60 }
  0xbf   : > { %v557_v40 = vmul.f32 2.0, %v439_v25 }
  0xc0   : > { %v378_v62 = vpop.permute.xlu0 %377  ;;  %v558_v41 = vmul.f32 2.0, %v440_v26 }
  0xc1   : > { %v383_v63 = vpop.permute.xlu1 %382  ;;  %v441_v32 = vmul.f32 %v1351_v10, %v378_v62 }
  0xc2   : > { %v442_v33 = vmul.f32 %v1351_v10, %v383_v63 }
  0xc3   : > { %v559_v49 = vmul.f32 2.0, %v441_v32 }
  0xc4   : > { %v388_v1 = vpop.permute.xlu0 %387  ;;  %v560_v50 = vmul.f32 2.0, %v442_v33 }
  0xc5   : > { %v393_v2 = vpop.permute.xlu1 %392  ;;  %v443_v35 = vmul.f32 %v1351_v10, %v388_v1 }
  0xc6   : > { %v444_v45 = vmul.f32 %v1351_v10, %v393_v2 }
  0xc7   : > { %v561_v53 = vmul.f32 2.0, %v443_v35 }
  0xc8   : > { %v398_v5 = vpop.permute.xlu0 %397  ;;  %v562_v62 = vmul.f32 2.0, %v444_v45 }
  0xc9   : > { %v403_v6 = vpop.permute.xlu1 %402  ;;  %v445_v57 = vmul.f32 %v1351_v10, %v398_v5 }
  0xca   : > { %v446_v2 = vmul.f32 %v1351_v10, %v403_v6 }
  0xcb   : > { %v563_v17 = vmul.f32 2.0, %v445_v57 }
  0xcc   : > { %v1347_v8 = vpop.permute.xlu0 %407  ;;  %v564_v25 = vmul.f32 2.0, %v446_v2 }
  0xcd   : > { %v1349_v9 = vpop.permute.xlu1 %412  ;;  %v447_v7 = vmul.f32 %v1351_v10, %v1347_v8 }
  0xd0   : > { %v1353_v12 = vpop.permute.xlu0 %417 }
  0xd1   : > { %v1355_v13 = vpop.permute.xlu1 %422 }
  0xd4   : > { %v1360_v16 = vpop.permute.xlu0 %427 }
  0xd5   : > { %v455_v18 = vpop.permute.xlu1 %454 }
  0xd6   : > { %v538_v21 = vadd.f32 %v1358_v15, %v455_v18 }
  0xd8   : > { %v570_v22 = vsub.f32 %v538_v21, %v554_v19  ;;  %v460_v23 = vpop.permute.xlu0 %459 }
  0xd9   : > { %v539_v27 = vadd.f32 %v1358_v15, %v460_v23  ;;  %v465_v28 = vpop.permute.xlu1 %464 }
  0xda   : > { %v586_v30 = vmax.f32 %v570_v22, 0.0  ;;  %v540_v31 = vadd.f32 %v1358_v15, %v465_v28  ;;  %v448_v22 = vmul.f32 %v1351_v10, %v1349_v9 }
  0xdb   : > { %v571_v34 = vsub.f32 %v539_v27, %v555_v24  ;;  %v565_v27 = vmul.f32 2.0, %v447_v7 }
  0xdc   : > { %v603_v37 = vmul.f32 -0.5, %v586_v30  ;;  %v572_v38 = vsub.f32 %v540_v31, %v556_v29  ;;  %v470_v39 = vpop.permute.xlu0 %469  ;;  %v449_v31 = vmul.f32 %v1351_v10, %v1353_v12  ;;  %v450_v12 = vmul.f32 %v1351_v10, %v1355_v13 }
  0xdd   : > { %v587_v42 = vmax.f32 %v571_v34, 0.0  ;;  %v541_v43 = vadd.f32 %v1358_v15, %v470_v39  ;;  %v475_v44 = vpop.permute.xlu1 %474 }
  0xde   : > { %v619_v46 = vmul.f32 1.442695, %v603_v37  ;;  %v588_v47 = vmax.f32 %v572_v38, 0.0  ;;  %v542_v48 = vadd.f32 %v1358_v15, %v475_v44  ;;  %v566_v37 = vmul.f32 2.0, %v448_v22 }
  0xdf   : > { %v604_v51 = vmul.f32 -0.5, %v587_v42  ;;  %v573_v52 = vsub.f32 %v541_v43, %v557_v40 }
  0xe0   : > { %1019 = vpow2.f32 %v619_v46  ;;  %v605_v54 = vmul.f32 -0.5, %v588_v47  ;;  %v574_v55 = vsub.f32 %v542_v48, %v558_v41  ;;  %v480_v56 = vpop.permute.xlu0 %479  ;;  %v567_v48 = vmul.f32 2.0, %v449_v31 }
  0xe1   : > { %v621_v58 = vmul.f32 1.442695, %v604_v51  ;;  %v589_v59 = vmax.f32 %v573_v52, 0.0  ;;  %v543_v60 = vadd.f32 %v1358_v15, %v480_v56  ;;  %v485_v61 = vpop.permute.xlu1 %484 }
  0xe2   : > { %v623_v63 = vmul.f32 1.442695, %v605_v54  ;;  %v590_v0 = vmax.f32 %v574_v55, 0.0  ;;  %v544_v1 = vadd.f32 %v1358_v15, %v485_v61 }
  0xe3   : > { %1021 = vpow2.f32 %v621_v58  ;;  %v606_v3 = vmul.f32 -0.5, %v589_v59  ;;  %v575_v4 = vsub.f32 %v543_v60, %v559_v49  ;;  %v568_v60 = vmul.f32 2.0, %v450_v12 }
  0xe4   : > { %1023 = vpow2.f32 %v623_v63  ;;  %v607_v5 = vmul.f32 -0.5, %v590_v0  ;;  %v576_v11 = vsub.f32 %v544_v1, %v560_v50  ;;  %v490_v14 = vpop.permute.xlu0 %489  ;;  %v451_v1 = vmul.f32 %v1351_v10, %v1360_v16 }
  0xe5   : > { %v625_v18 = vmul.f32 1.442695, %v606_v3  ;;  %v591_v19 = vmax.f32 %v575_v4, 0.0  ;;  %v545_v20 = vadd.f32 %v1358_v15, %v490_v14  ;;  %v495_v21 = vpop.permute.xlu1 %494 }
  0xe6   : > { %v627_v6 = vmul.f32 1.442695, %v607_v5  ;;  %v592_v23 = vmax.f32 %v576_v11, 0.0  ;;  %v546_v24 = vadd.f32 %v1358_v15, %v495_v21 }
  0xe7   : > { %1025 = vpow2.f32 %v625_v18  ;;  %v608_v8 = vmul.f32 -0.5, %v591_v19  ;;  %v577_v26 = vsub.f32 %v545_v20, %v561_v53 }
  0xe8   : > { %1027 = vpow2.f32 %v627_v6  ;;  %v609_v28 = vmul.f32 -0.5, %v592_v23  ;;  %v578_v29 = vsub.f32 %v546_v24, %v562_v62  ;;  %v500_v30 = vpop.permute.xlu0 %499  ;;  %v569_v23 = vmul.f32 2.0, %v451_v1 }
  0xe9   : > { %v629_v32 = vmul.f32 1.442695, %v608_v8  ;;  %v593_v33 = vmax.f32 %v577_v26, 0.0  ;;  %v547_v9 = vadd.f32 %v1358_v15, %v500_v30  ;;  %v505_v34 = vpop.permute.xlu1 %504 }
  0xea   : > { %v1020_v35 = vpop.eup %1019  ;;  %v631_v38 = vmul.f32 1.442695, %v609_v28  ;;  %v594_v39 = vmax.f32 %v578_v29, 0.0  ;;  %v548_v40 = vadd.f32 %v1358_v15, %v505_v34 }
  0xeb   : > { %v652_v41 = vmul.f32 %v1020_v35, %v1372_v36  ;;  %1029 = vpow2.f32 %v629_v32  ;;  %v610_v42 = vmul.f32 -0.5, %v593_v33  ;;  %v579_v43 = vsub.f32 %v547_v9, %v563_v17 }
  0xec   : > { %1031 = vpow2.f32 %v631_v38  ;;  %v611_v44 = vmul.f32 -0.5, %v594_v39  ;;  %v580_v45 = vsub.f32 %v548_v40, %v564_v25  ;;  %v510_v46 = vpop.permute.xlu0 %509 }
  0xed   : > { %v1022_v47 = vpop.eup %1021  ;;  %668 = vst [vmem:[%s1304_s16] sm:$0xff] %v652_v41  ;;  %v633_v49 = vmul.f32 1.442695, %v610_v42  ;;  %v595_v50 = vmax.f32 %v579_v43, 0.0  ;;  %v549_v51 = vadd.f32 %v1358_v15, %v510_v46  ;;  %v515_v52 = vpop.permute.xlu1 %514 }
  0xee   : > { %v1024_v53 = vpop.eup %1023  ;;  %v653_v54 = vmul.f32 %v1022_v47, %v1372_v36  ;;  %v635_v55 = vmul.f32 1.442695, %v611_v44  ;;  %v596_v56 = vmax.f32 %v580_v45, 0.0  ;;  %v550_v13 = vadd.f32 %v1358_v15, %v515_v52 }
  0xef   : > { %v654_v57 = vmul.f32 %v1024_v53, %v1372_v36  ;;  %1033 = vpow2.f32 %v633_v49  ;;  %v612_v58 = vmul.f32 -0.5, %v595_v50  ;;  %v581_v59 = vsub.f32 %v549_v51, %v565_v27 }
  0xf0   : > { %669 = vst [vmem:[%s1304_s16 + $0x8] sm:$0xff] %v653_v54  ;;  %1035 = vpow2.f32 %v635_v55  ;;  %v613_v61 = vmul.f32 -0.5, %v596_v56  ;;  %v582_v62 = vsub.f32 %v550_v13, %v566_v37  ;;  %v520_v63 = vpop.permute.xlu0 %519 }
  0xf1   : > { %v1026_v0 = vpop.eup %1025  ;;  %670 = vst [vmem:[%s1304_s16 + $0x10] sm:$0xff] %v654_v57  ;;  %v637_v2 = vmul.f32 1.442695, %v612_v58  ;;  %v597_v3 = vmax.f32 %v581_v59, 0.0  ;;  %v551_v4 = vadd.f32 %v1358_v15, %v520_v63  ;;  %v525_v7 = vpop.permute.xlu1 %524 }
  0xf2   : > { %v1028_v5 = vpop.eup %1027  ;;  %v655_v11 = vmul.f32 %v1026_v0, %v1372_v36  ;;  %v639_v14 = vmul.f32 1.442695, %v613_v61  ;;  %v598_v17 = vmax.f32 %v582_v62, 0.0  ;;  %v552_v18 = vadd.f32 %v1358_v15, %v525_v7 }
  0xf3   : > { %v656_v19 = vmul.f32 %v1028_v5, %v1372_v36  ;;  %1037 = vpow2.f32 %v637_v2  ;;  %v614_v20 = vmul.f32 -0.5, %v597_v3  ;;  %v583_v21 = vsub.f32 %v551_v4, %v567_v48 }
  0xf4   : > { %671 = vst [vmem:[%s1304_s16 + $0x18] sm:$0xff] %v655_v11  ;;  %1039 = vpow2.f32 %v639_v14  ;;  %v615_v10 = vmul.f32 -0.5, %v598_v17  ;;  %v584_v16 = vsub.f32 %v552_v18, %v568_v60  ;;  %v530_v22 = vpop.permute.xlu0 %529 }
  0xf5   : > { %v1030_v6 = vpop.eup %1029  ;;  %672 = vst [vmem:[%s1304_s16 + $0x20] sm:$0xff] %v656_v19  ;;  %v641_v24 = vmul.f32 1.442695, %v614_v20  ;;  %v599_v25 = vmax.f32 %v583_v21, 0.0  ;;  %v553_v8 = vadd.f32 %v1358_v15, %v530_v22 }
  0xf6   : > { %v1032_v26 = vpop.eup %1031  ;;  %v657_v27 = vmul.f32 %v1030_v6, %v1372_v36  ;;  %v643_v28 = vmul.f32 1.442695, %v615_v10  ;;  %v600_v29 = vmax.f32 %v584_v16, 0.0 }
  0xf7   : > { %v658_v30 = vmul.f32 %v1032_v26, %v1372_v36  ;;  %1041 = vpow2.f32 %v641_v24  ;;  %v616_v31 = vmul.f32 -0.5, %v599_v25  ;;  %v585_v32 = vsub.f32 %v553_v8, %v569_v23 }
  0xf8   : > { %673 = vst [vmem:[%s1304_s16 + $0x28] sm:$0xff] %v657_v27  ;;  %1043 = vpow2.f32 %v643_v28  ;;  %v617_v33 = vmul.f32 -0.5, %v600_v29 }
  0xf9   : > { %v1034_v9 = vpop.eup %1033  ;;  %674 = vst [vmem:[%s1304_s16 + $0x30] sm:$0xff] %v658_v30  ;;  %v645_v34 = vmul.f32 1.442695, %v616_v31  ;;  %v601_v35 = vmax.f32 %v585_v32, 0.0 }
  0xfa   : > { %v1036_v15 = vpop.eup %1035  ;;  %v659_v37 = vmul.f32 %v1034_v9, %v1372_v36  ;;  %v647_v38 = vmul.f32 1.442695, %v617_v33 }
  0xfb   : > { %v660_v39 = vmul.f32 %v1036_v15, %v1372_v36  ;;  %1045 = vpow2.f32 %v645_v34  ;;  %v618_v40 = vmul.f32 -0.5, %v601_v35 }
  0xfc   : > { %675 = vst [vmem:[%s1304_s16 + $0x38] sm:$0xff] %v659_v37  ;;  %1047 = vpow2.f32 %v647_v38 }
  0xfd   : > { %v1038_v41 = vpop.eup %1037  ;;  %676 = vst [vmem:[%s1304_s16 + $0x40] sm:$0xff] %v660_v39  ;;  %v649_v42 = vmul.f32 1.442695, %v618_v40 }
  0xfe   : > { %v1040_v43 = vpop.eup %1039  ;;  %v661_v12 = vmul.f32 %v1038_v41, %v1372_v36 }
  0xff   : > { %v662_v44 = vmul.f32 %v1040_v43, %v1372_v36  ;;  %1049 = vpow2.f32 %v649_v42 }
 0x100   : > { %677 = vst [vmem:[%s1304_s16 + $0x48] sm:$0xff] %v661_v12 }
 0x101   : > { %v1042_v45 = vpop.eup %1041  ;;  %678 = vst [vmem:[%s1304_s16 + $0x50] sm:$0xff] %v662_v44 }
 0x102   : > { %v1044_v46 = vpop.eup %1043  ;;  %v663_v47 = vmul.f32 %v1042_v45, %v1372_v36 }
 0x103   : > { %v664_v48 = vmul.f32 %v1044_v46, %v1372_v36 }
 0x104   : > { %679 = vst [vmem:[%s1304_s16 + $0x58] sm:$0xff] %v663_v47 }
 0x105   : > { %v1046_v49 = vpop.eup %1045  ;;  %680 = vst [vmem:[%s1304_s16 + $0x60] sm:$0xff] %v664_v48 }
 0x106   : > { %v1048_v50 = vpop.eup %1047  ;;  %v665_v51 = vmul.f32 %v1046_v49, %v1372_v36 }
 0x107   : > { %v666_v52 = vmul.f32 %v1048_v50, %v1372_v36 }
 0x108   : > { %681 = vst [vmem:[%s1304_s16 + $0x68] sm:$0xff] %v665_v51 }
 0x109   : > { %v1050_v53 = vpop.eup %1049  ;;  %682 = vst [vmem:[%s1304_s16 + $0x70] sm:$0xff] %v666_v52 }
 0x10a   : > { %v667_v54 = vmul.f32 %v1050_v53, %v1372_v36 }
 0x10c   : > { %683 = vst [vmem:[%s1304_s16 + $0x78] sm:$0xff] %v667_v54 }
 0x10d PF: > { %s938_s22 = sadd.s32 128, %s1302_s15  ;;  %p688_p7 = scmp.lt.s32.totalorder %s1302_s15, %s1299_s14 }
 0x10e   : > { %p687_p9 = scmp.lt.s32.totalorder %s1287_s23, %s938_s22 }
 0x110   : > { %p689_p10 = pnand %p688_p7, %p687_p9 }
 0x111   : > { %v693_v55 = vlaneseq (!%p689_p10)  ;;  %s928_s24 = sld [smem:[#allocation3 + $0x1]] (!%p689_p10)  ;;  %v1437_v56 = vstv (!%p689_p10), %s1287_s23  ;;  %v729_v13 = vstv (!%p689_p10), %s1302_s15  ;;  %v731_v62 = vld [vmem:[%s1304_s16] sm:$0xff] (!%p689_p10)  ;;  %v732_v11 = vld [vmem:[%s1304_s16 + $0x8] sm:$0xff] (!%p689_p10) }
 0x112   : > { %692 = sbr.rel (%p689_p10) target bundleno = 303 (0x12f), region = 48  ;;  %v733_v14 = vld [vmem:[%s1304_s16 + $0x10] sm:$0xff] (!%p689_p10)  ;;  %v734_v21 = vld [vmem:[%s1304_s16 + $0x18] sm:$0xff] (!%p689_p10)  ;;  %v735_v10 = vld [vmem:[%s1304_s16 + $0x20] sm:$0xff] (!%p689_p10) }
 0x113   : > { %v1440_v36 = vshrl.u32 (!%p689_p10), %v693_v55, 7  ;;  %v728_v57 = vand.u32 (!%p689_p10), 127, %v693_v55  ;;  %v736_v26 = vld [vmem:[%s1304_s16 + $0x28] sm:$0xff] (!%p689_p10)  ;;  %v737_v27 = vld [vmem:[%s1304_s16 + $0x30] sm:$0xff] (!%p689_p10)  ;;  %v738_v41 = vld [vmem:[%s1304_s16 + $0x38] sm:$0xff] (!%p689_p10) }
 0x114   : > { %v739_v42 = vld [vmem:[%s1304_s16 + $0x40] sm:$0xff] (!%p689_p10)  ;;  %v740_v46 = vld [vmem:[%s1304_s16 + $0x48] sm:$0xff] (!%p689_p10)  ;;  %v741_v47 = vld [vmem:[%s1304_s16 + $0x50] sm:$0xff] (!%p689_p10) }
 0x115   : > { %v711_v58 = vadd.s32 (!%p689_p10), %v1437_v56, %v1440_v36  ;;  %v1444_v59 = vadd.s32 (!%p689_p10), %v729_v13, %v728_v57  ;;  %v695_v60 = vadd.s32 (!%p689_p10), 8, %v1440_v36  ;;  %v696_v61 = vadd.s32 (!%p689_p10), 16, %v1440_v36  ;;  %v742_v13 = vld [vmem:[%s1304_s16 + $0x58] sm:$0xff] (!%p689_p10)  ;;  %v743_v57 = vld [vmem:[%s1304_s16 + $0x60] sm:$0xff] (!%p689_p10) }
 0x116   : > { %v697_v63 = vadd.s32 (!%p689_p10), 24, %v1440_v36  ;;  %v698_v0 = vadd.s32 (!%p689_p10), 32, %v1440_v36  ;;  %v699_v1 = vadd.s32 (!%p689_p10), 40, %v1440_v36  ;;  %v700_v2 = vadd.s32 (!%p689_p10), 48, %v1440_v36 }
 0x117   : > { %vm747_vm0 = vcmp.eq.s32.totalorder (!%p689_p10), %v711_v58, %v1444_v59  ;;  %v1454_v3 = vstv (!%p689_p10), %s928_s24  ;;  %v712_v4 = vadd.s32 (!%p689_p10), %v1437_v56, %v695_v60  ;;  %v713_v7 = vadd.s32 (!%p689_p10), %v1437_v56, %v696_v61 }
 0x118   : > { %v765_v5 = vsel (!%p689_p10), %vm747_vm0, %v1454_v3, 0.0  ;;  %v714_v17 = vadd.s32 (!%p689_p10), %v1437_v56, %v697_v63  ;;  %v715_v18 = vadd.s32 (!%p689_p10), %v1437_v56, %v698_v0  ;;  %v716_v19 = vadd.s32 (!%p689_p10), %v1437_v56, %v699_v1 }
 0x119   : > { %v781_v20 = vadd.f32 %v765_v5, %v731_v62  ;;  %vm748_vm1 = vcmp.eq.s32.totalorder %v712_v4, %v1444_v59  ;;  %vm749_vm2 = vcmp.eq.s32.totalorder %v713_v7, %v1444_v59  ;;  %v717_v16 = vadd.s32 %v1437_v56, %v700_v2  ;;  %v744_v4 = vld [vmem:[%s1304_s16 + $0x68] sm:$0xff]  ;;  %v745_v7 = vld [vmem:[%s1304_s16 + $0x70] sm:$0xff] }
 0x11a   : > { %v766_v22 = vsel %vm748_vm1, %v1454_v3, 0.0  ;;  %v767_v6 = vsel %vm749_vm2, %v1454_v3, 0.0  ;;  %vm750_vm3 = vcmp.eq.s32.totalorder %v714_v17, %v1444_v59  ;;  %vm751_vm4 = vcmp.eq.s32.totalorder %v715_v18, %v1444_v59 }
 0x11b   : > { %797 = vst [vmem:[%s1304_s16] sm:$0xff] %v781_v20  ;;  %v782_v23 = vadd.f32 %v766_v22, %v732_v11  ;;  %v783_v24 = vadd.f32 %v767_v6, %v733_v14  ;;  %v768_v25 = vsel %vm750_vm3, %v1454_v3, 0.0  ;;  %v769_v8 = vsel %vm751_vm4, %v1454_v3, 0.0  ;;  %v746_v20 = vld [vmem:[%s1304_s16 + $0x78] sm:$0xff] }
 0x11c   : > { %v784_v28 = vadd.f32 %v768_v25, %v734_v21  ;;  %v785_v29 = vadd.f32 %v769_v8, %v735_v10  ;;  %vm752_vm5 = vcmp.eq.s32.totalorder %v716_v19, %v1444_v59  ;;  %vm753_vm6 = vcmp.eq.s32.totalorder %v717_v16, %v1444_v59 }
 0x11d   : > { %798 = vst [vmem:[%s1304_s16 + $0x8] sm:$0xff] %v782_v23  ;;  %799 = vst [vmem:[%s1304_s16 + $0x10] sm:$0xff] %v783_v24  ;;  %v770_v30 = vsel %vm752_vm5, %v1454_v3, 0.0  ;;  %v771_v31 = vsel %vm753_vm6, %v1454_v3, 0.0  ;;  %v701_v32 = vadd.s32 56, %v1440_v36  ;;  %v702_v33 = vadd.s32 64, %v1440_v36 }
 0x11e   : > { %800 = vst [vmem:[%s1304_s16 + $0x18] sm:$0xff] %v784_v28  ;;  %801 = vst [vmem:[%s1304_s16 + $0x20] sm:$0xff] %v785_v29  ;;  %v786_v9 = vadd.f32 %v770_v30, %v736_v26  ;;  %v787_v34 = vadd.f32 %v771_v31, %v737_v27  ;;  %v703_v35 = vadd.s32 72, %v1440_v36  ;;  %v704_v15 = vadd.s32 80, %v1440_v36 }
 0x11f   : > { %v718_v37 = vadd.s32 %v1437_v56, %v701_v32  ;;  %v719_v38 = vadd.s32 %v1437_v56, %v702_v33  ;;  %v705_v39 = vadd.s32 88, %v1440_v36  ;;  %v706_v40 = vadd.s32 96, %v1440_v36 }
 0x120   : > { %802 = vst [vmem:[%s1304_s16 + $0x28] sm:$0xff] %v786_v9  ;;  %803 = vst [vmem:[%s1304_s16 + $0x30] sm:$0xff] %v787_v34  ;;  %v720_v43 = vadd.s32 %v1437_v56, %v703_v35  ;;  %v721_v12 = vadd.s32 %v1437_v56, %v704_v15  ;;  %v707_v44 = vadd.s32 104, %v1440_v36  ;;  %v708_v45 = vadd.s32 112, %v1440_v36 }
 0x121   : > { %vm754_vm7 = vcmp.eq.s32.totalorder %v718_v37, %v1444_v59  ;;  %vm755_vm8 = vcmp.eq.s32.totalorder %v719_v38, %v1444_v59  ;;  %v722_v48 = vadd.s32 %v1437_v56, %v705_v39  ;;  %v723_v49 = vadd.s32 %v1437_v56, %v706_v40 }
 0x122   : > { %v772_v50 = vsel %vm754_vm7, %v1454_v3, 0.0  ;;  %v773_v51 = vsel %vm755_vm8, %v1454_v3, 0.0  ;;  %vm756_vm9 = vcmp.eq.s32.totalorder %v720_v43, %v1444_v59  ;;  %vm757_vm10 = vcmp.eq.s32.totalorder %v721_v12, %v1444_v59 }
 0x123   : > { %v788_v52 = vadd.f32 %v772_v50, %v738_v41  ;;  %v789_v53 = vadd.f32 %v773_v51, %v739_v42  ;;  %v774_v54 = vsel %vm756_vm9, %v1454_v3, 0.0  ;;  %v775_v55 = vsel %vm757_vm10, %v1454_v3, 0.0 }
 0x124   : > { %v790_v58 = vadd.f32 %v774_v54, %v740_v46  ;;  %v791_v60 = vadd.f32 %v775_v55, %v741_v47  ;;  %vm758_vm11 = vcmp.eq.s32.totalorder %v722_v48, %v1444_v59  ;;  %vm759_vm12 = vcmp.eq.s32.totalorder %v723_v49, %v1444_v59 }
 0x125   : > { %804 = vst [vmem:[%s1304_s16 + $0x38] sm:$0xff] %v788_v52  ;;  %805 = vst [vmem:[%s1304_s16 + $0x40] sm:$0xff] %v789_v53  ;;  %v776_v61 = vsel %vm758_vm11, %v1454_v3, 0.0  ;;  %v777_v62 = vsel %vm759_vm12, %v1454_v3, 0.0  ;;  %v724_v63 = vadd.s32 %v1437_v56, %v707_v44  ;;  %v725_v0 = vadd.s32 %v1437_v56, %v708_v45 }
 0x126   : > { %806 = vst [vmem:[%s1304_s16 + $0x48] sm:$0xff] %v790_v58  ;;  %807 = vst [vmem:[%s1304_s16 + $0x50] sm:$0xff] %v791_v60  ;;  %v792_v1 = vadd.f32 %v776_v61, %v742_v13  ;;  %v793_v2 = vadd.f32 %v777_v62, %v743_v57  ;;  %v709_v5 = vadd.s32 120, %v1440_v36 }
 0x127   : > { %vm760_vm13 = vcmp.eq.s32.totalorder %v724_v63, %v1444_v59  ;;  %vm761_vm14 = vcmp.eq.s32.totalorder %v725_v0, %v1444_v59 }
 0x128   : > { %808 = vst [vmem:[%s1304_s16 + $0x58] sm:$0xff] %v792_v1  ;;  %809 = vst [vmem:[%s1304_s16 + $0x60] sm:$0xff] %v793_v2  ;;  %v778_v11 = vsel %vm760_vm13, %v1454_v3, 0.0  ;;  %v779_v14 = vsel %vm761_vm14, %v1454_v3, 0.0  ;;  %v726_v17 = vadd.s32 %v1437_v56, %v709_v5 }
 0x129   : > { %v794_v18 = vadd.f32 %v778_v11, %v744_v4  ;;  %v795_v19 = vadd.f32 %v779_v14, %v745_v7 }
 0x12a   : > { %vm762_vm15 = vcmp.eq.s32.totalorder %v726_v17, %v1444_v59 }
 0x12b   : > { %810 = vst [vmem:[%s1304_s16 + $0x68] sm:$0xff] %v794_v18  ;;  %811 = vst [vmem:[%s1304_s16 + $0x70] sm:$0xff] %v795_v19  ;;  %v780_v36 = vsel %vm762_vm15, %v1454_v3, 0.0 }
 0x12c   : > { %v796_v21 = vadd.f32 %v780_v36, %v746_v20 }
 0x12e   : > { %812 = vst [vmem:[%s1304_s16 + $0x78] sm:$0xff] %v796_v21 }
 0x12f PF: > { %s939_s23 = sshll.u32 %s1147_s28, 5  ;;  %s829_s26 = sshll.u32 %s1304_s16, 4  ;;  %s1545_s26 = int_to_ptr.vmem [resolvable:$true] %s829_s26 }
 0x130   : > { %s826_s25 = sadd.s32 %s1143_s27, %s939_s23  ;;  %s1554_s15 = scalar_lea.sflag [#allocation7], %s225_s18 }
 0x131   : > { %s932_s7 = sshll.u32 %s826_s25, 7  ;;  %s1063_s19 = scalar_lea.vmem %s1545_s26, 2048 }
 0x132   : > { %s1550_s14 = scalar_lea.hbm %s1609_s5, %s932_s7  ;;  %p1064_p11 = scmp.ne.s32.totalorder %s1545_s26, %s1063_s19 }
 0x133   : > { %s1164_s27 = smov [#allocation6]  }
 0x134   : > { %p1065_p12 = pnand %p1064_p11, %p1258_p8  ;;  %s1067_s28 = sshll.u32 %s1164_s27, 4  ;;  %s1068_s28 = int_to_ptr.vmem [resolvable:$false] %s1067_s28 }
 0x135   : > { %s1069_s16 = scalar_lea.vmem %s1068_s28, 4096  ;;  %p1070_p1 = scmp.lt.s32.totalorder %s1545_s26, %s1068_s28 }
 0x136   : > { %p1066_p0 = pneg %p1065_p12  ;;  %p1071_p2 = scmp.lt.s32.totalorder %s1069_s16, %s1063_s19 }
 0x138   : > { %p1072_p3 = por %p1071_p2, %p1070_p1 }
 0x13a   : > { %p1073_p4 = pnand %p1072_p3, %p1066_p0 }
 0x13c   : > { %1076 = shalt.err (!%p1073_p4)
}
 0x13d   : > { %s1077_s18 = scalar_lea.hbm %s1550_s14, 2048  ;;  %s1081_s22 = scalar_lea.hbm %s1609_s5, 8192 }
 0x13e   : > { %p1078_p5 = scmp.ne.s32.totalorder %s1550_s14, %s1077_s18  ;;  %p1082_p9 = scmp.lt.u32.totalorder %s1550_s14, %s1609_s5 }
 0x13f   : > { %p1083_p10 = scmp.lt.u32.totalorder %s1081_s22, %s1077_s18  ;;  %p1085_p12 = scmp.lt.u32.totalorder %s1077_s18, %s1550_s14 }
 0x140   : > { %p1079_p6 = pnand %p1078_p5, %p1258_p8 }
 0x141   : > { %p1084_p11 = por %p1083_p10, %p1082_p9 }
 0x142   : > { %p1080_p7 = pneg %p1079_p6 }
 0x143   : > { %p1086_p0 = por %p1085_p12, %p1084_p11 }
 0x145   : > { %p1087_p1 = pnand %p1086_p0, %p1080_p7 }
 0x147   : > { %1090 = shalt.err (!%p1087_p1)
}
 0x148   : > { %s1165_s25 = smov 128   ;;  %s1166_s7 = smov 256  }
 0x149   : > { %s1167_s8 = smov 8  }
 0x14a   : > { %940 = dma.vmem_to_hbm [thread:$0]  (%p1258_p8), %s1545_s26, 2048, %s1550_s14, %s1554_s15, %s1165_s25, %s1166_s7, %s1167_s8  }
 0x14b PF: > { %p946_p2 = scmp.ge.s32.totalorder %s1159_s6, 2  ;;  %s844_s11 = sand.u32 1, %s1131_s0  }
 0x14c   : > { %s845_s19 = scalar_lea.sflag [#allocation7], %s844_s11 }
 0x14d   : > { %p943_p3 = pnand %p946_p2, %p1267_p13 }
 0x14f   : > { %1126 = dma.done.wait (!%p943_p3), %s845_s19, 2048  }
 0x150   : > { %1128 = vsyncadd (!%p943_p3), %s845_s19, 4294965248  ;;  %s28_s6 = sadd.s32 1, %s1159_s6   ;;  %s1614_s0 = smov %s1135_s3 }
 0x151   : > { %p25_p4 = scmp.ge.s32.totalorder %s28_s6, 6   ;;  %s1615_s3 = smov %s1139_s4 }
 0x152   : > { %s1616_s4 = smov %s1276_s17  ;;  %s1617_s27 = smov %s1151_s29 }
 0x153   : > { %s1618_s28 = smov %s1155_s30  ;;  %s1619_s29 = smov %s1622_s9 }
 0x154   : > { %s1620_s30 = smov %s1626_s10  ;;  %27 = sbr.rel (!%p25_p4) target bundleno = 20 (0x14), region = 86 }
 0x15b   :  { %850 = vsyncpa [#allocation7], 1 }
 0x15c   :  { %852 = vsyncpa [#allocation7 + $0x1], 1 }

</bundles_post_ra>
